<compile_context>
chip_gen: v5e
topology: v5e:2x2
jax: 0.10.0
libtpu: 0.0.40
codegen_flags: <defaults>
</compile_context>

<pallas_src>
import numpy as np

import jax
import jax.numpy as jnp
from jax import lax
from jax.experimental import pallas as pl
from jax.experimental.pallas import tpu as pltpu


def _round_up(x, m):
    return -(-x // m) * m


def _vmem_capacity_bytes():
    """Physical VMEM of the attached TPU (fallback: v7x's 64 MiB)."""
    try:
        fn = getattr(pltpu, "get_tpu_info", None)
        if fn is not None:
            cap = getattr(fn(), "vmem_capacity_bytes", None)
            if cap:
                return int(cap)
    except Exception:
        pass
    return 64 * 1024 * 1024


def _pick_nb(N, C, Lx, budget_bytes):
    """Batches per grid step: whole batches only (so the per-row weight pattern
    is identical every step), sublane-dense when possible, VMEM-bounded, and
    biased toward >= 4 grid steps so a 2-TC part (v7x) can shard the grid."""
    divisors = [d for d in range(1, N + 1) if N % d == 0]
    pref = [d for d in divisors if (d * C) % 8 == 0] or divisors
    per_batch = 4 * C * Lx * 5        # ~double-buffered x+label blocks + temporaries
    fits = [d for d in pref if d * per_batch <= budget_bytes] or [min(pref)]
    at_least_4_steps = [d for d in fits if N // d >= 4]
    return max(at_least_4_steps) if at_least_4_steps else max(fits)


def _pick_lane_chunk(Lx, halo):
    """Lane-chunk width: divides Lx, multiple of 128, >= halo (so every
    non-final chunk's halo read stays inside the block), ~512 lanes preferred
    for vreg residency."""
    divisors = [d for d in range(128, Lx + 1, 128) if Lx % d == 0 and d >= halo]
    if not divisors:
        return Lx
    preferred = [d for d in divisors if d >= 512]
    return min(preferred) if preferred else max(divisors)


def _make_kernel(R, Lx, LC, HALO, T, KH, KW, W):
    """Kernel over one grid step: a block of R = nb*C planes.

    x_ref:    (R, Lx)  flattened planes (lane = h*W + w), pure reshape of HBM data
    lab_ref:  (R, Lx)  labels zero-padded into the same lane layout
    w_ref:    (R, T)   per-sublane-row tap weights, w[r, i*KW+j] = mtf[i, j, r % C]
    mask_ref: (1, Lx)  1.0 on lanes holding a valid conv output position, else 0
    o_ref:    (1, Lx)  per-grid-step partial row sums of |conv - label|
    """
    n_chunks = Lx // LC
    n_inner = n_chunks - 1

    def kernel(x_ref, lab_ref, w_ref, mask_ref, o_ref):
        # Hoist the per-tap weight columns once per step; they are lane-constant
        # so every lane chunk reuses the same (R, 1) columns.
        w = w_ref[...]
        wcols = [w[:, t:t + 1] for t in range(T)]

        def rowsum(slab, lab):
            # slab: (R, LC + HALO) input lanes, lab: (R, LC).
            # All taps + abs-diff + sublane-reduce stay chunk-local (vreg-resident).
            acc = wcols[0] * slab[:, 0:LC]
            for t in range(1, T):
                i, j = divmod(t, KW)
                d = i * W + j
                acc = acc + wcols[t] * slab[:, d:d + LC]
            return jnp.sum(jnp.abs(acc - lab), axis=0, keepdims=True)     # (1, LC)

        def emit_static(slab, b):
            row = rowsum(slab, lab_ref[:, b:b + LC])
            # Mask AFTER the sublane reduce (one (1, LC) multiply); invalid lanes
            # hold finite garbage and are zeroed here.  Keep this ordering.
            o_ref[:, b:b + LC] = row * mask_ref[:, b:b + LC]

        if n_inner > 0:
            if n_inner <= 32:
                # Few chunks: unrolled static slices (best LLO visibility).
                for c in range(n_inner):
                    b = c * LC
                    emit_static(x_ref[:, b:b + LC + HALO], b)
            else:
                # Many chunks: bounded trace size via an in-kernel loop.
                def body(c, carry):
                    b = pl.multiple_of(c * LC, 128)
                    slab = x_ref[:, pl.ds(b, LC + HALO)]
                    row = rowsum(slab, lab_ref[:, pl.ds(b, LC)])
                    o_ref[:, pl.ds(b, LC)] = row * mask_ref[:, pl.ds(b, LC)]
                    return carry
                lax.fori_loop(0, n_inner, body, 0)

        # Last chunk: its halo would run past the block, but only invalid
        # (masked) lanes ever read it, so reuse the block head as finite filler.
        b_last = Lx - LC
        slab_last = jnp.concatenate([x_ref[:, b_last:], x_ref[:, :HALO]], axis=-1)
        emit_static(slab_last, b_last)

    return kernel


def spectral_loss_nocorr_v(outputs, labels, mtf):
    """outputs: (N, C, H, W) f32; labels: (N, C, OH, OW) f32; mtf: (KH, KW, C)."""
    outputs = jnp.asarray(outputs, jnp.float32)
    labels = jnp.asarray(labels, jnp.float32)
    N, C, H, W = outputs.shape
    KH, KW, Cb = np.shape(mtf)
    assert Cb == C, "mtf band count must match channel count"
    OH, OW = H - KH + 1, W - KW + 1
    assert labels.shape == (N, C, OH, OW)
    T = KH * KW
    total = N * C * OH * OW
    P = N * C

    HW = H * W
    Lx = _round_up(HW, 128)                      # lane-dense row width (item 3)
    max_d = (KH - 1) * W + (KW - 1)              # largest tap lane shift
    HALO = max(128, _round_up(max_d, 128))
    LC = _pick_lane_chunk(Lx, HALO)

    cap = _vmem_capacity_bytes()
    nb = _pick_nb(N, C, Lx, budget_bytes=cap // 8)
    R = nb * C                                   # planes (sublane rows) per grid step
    G = N // nb                                  # grid size

    # ---- operand preparation: no transposes ------------------------------
    # outputs: pure reshape (contiguous collapse) -> (P, H*W); lane pad only if
    # H*W is not already a multiple of 128.
    x2d = outputs.reshape(P, HW)
    if Lx != HW:
        x2d = jnp.pad(x2d, ((0, 0), (0, Lx - HW)))
    # labels: one zero-pad (OH,OW)->(H,W) so label[oh,ow] lands on the same lane
    # (oh*W + ow) as the conv output; this is the only wrapper-side copy.
    lab2d = jnp.pad(labels, ((0, 0), (0, 0), (0, H - OH), (0, W - OW))).reshape(P, HW)
    if Lx != HW:
        lab2d = jnp.pad(lab2d, ((0, 0), (0, Lx - HW)))

    # Per-sublane-row tap weights (tiny: R x T) and the per-lane validity mask.
    wt = np.moveaxis(np.asarray(mtf, np.float32), -1, 0).reshape(C, T)   # (C, T)
    w_rows = jnp.asarray(np.tile(wt, (nb, 1)))                           # (R, T)
    mvalid = np.zeros((H, W), np.float32)
    mvalid[:OH, :OW] = 1.0
    mask_np = np.zeros((1, Lx), np.float32)
    mask_np[0, :HW] = mvalid.reshape(-1)
    mask = jnp.asarray(mask_np)

    kernel = _make_kernel(R, Lx, LC, HALO, T, KH, KW, W)

    flops = 2 * total * T + 3 * total
    bytes_accessed = 4 * (2 * P * Lx + G * Lx + R * T + Lx)
    cost = pl.CostEstimate(flops=int(flops), transcendentals=0,
                           bytes_accessed=int(bytes_accessed))

    vmem_limit = int(min(cap * 3 // 4, 96 * 1024 * 1024))

    partials = pl.pallas_call(
        kernel,
        out_shape=jax.ShapeDtypeStruct((G, 1, Lx), jnp.float32),
        grid_spec=pltpu.PrefetchScalarGridSpec(
            num_scalar_prefetch=0,
            grid=(G,),
            in_specs=[
                # one (R, Lx) block of nb*C flattened planes per grid step
                pl.BlockSpec((R, Lx), lambda g: (g, 0)),
                # matching label block (same lane layout, zero on invalid lanes)
                pl.BlockSpec((R, Lx), lambda g: (g, 0)),
                # per-row tap weights (tiny, identical every step -> stays resident)
                pl.BlockSpec((R, T), lambda g: (0, 0)),
                # per-lane validity mask (tiny, identical every step)
                pl.BlockSpec((1, Lx), lambda g: (0, 0)),
            ],
            # each grid step owns its own lane-dense partial-sum row -> no shared
            # state, grid axis is truly parallel (megacore shards it on v7x)
            out_specs=pl.BlockSpec((None, 1, Lx), lambda g: (g, 0, 0)),
        ),
        compiler_params=pltpu.CompilerParams(
            dimension_semantics=("parallel",),
            vmem_limit_bytes=vmem_limit),
        cost_estimate=cost,
    )(x2d, lab2d, w_rows, mask)

    # Single final reduce + mean outside the kernel.
    return jnp.sum(partials) / jnp.float32(total)


def _reference_loss(outputs, labels, mtf):
    """Pure-JAX reference matching torch depthwise Conv2d + L1Loss(mean)."""
    C = mtf.shape[-1]
    w = jnp.moveaxis(jnp.asarray(mtf, jnp.float32), -1, 0)[:, None]  # (C,1,KH,KW)
    conv = jax.lax.conv_general_dilated(
        outputs, w, window_strides=(1, 1), padding="VALID",
        dimension_numbers=("NCHW", "OIHW", "NCHW"),
        feature_group_count=C)
    return jnp.mean(jnp.abs(conv - labels))


def _make_mtf(kh, kw, nbands):
    """Deterministic Gaussian-like MTF kernels, shape (kh, kw, nbands)."""
    ys = np.arange(kh) - (kh - 1) / 2.0
    xs = np.arange(kw) - (kw - 1) / 2.0
    yy, xx = np.meshgrid(ys, xs, indexing="ij")
    bands = []
    for b in range(nbands):
        sigma = 0.8 + 0.3 * b
        g = np.exp(-(xx ** 2 + yy ** 2) / (2.0 * sigma ** 2))
        g = g / g.sum()
        bands.append(g.astype(np.float32))
    return np.stack(bands, axis=-1)  # (kh, kw, nbands)


if __name__ == "__main__":
    # Small shapes consistent with the module's forward:
    #   outputs: (N, nbands, H, W), labels: (N, nbands, H-KH+1, W-KW+1)
    N, C, H, W = 2, 4, 16, 16
    KH, KW = 5, 5
    OH, OW = H - KH + 1, W - KW + 1

    mtf = _make_mtf(KH, KW, C)

    key = jax.random.PRNGKey(0)
    k1, k2 = jax.random.split(key)
    outputs = jax.random.normal(k1, (N, C, H, W), dtype=jnp.float32)
    labels = jax.random.normal(k2, (N, C, OH, OW), dtype=jnp.float32)

    loss = spectral_loss_nocorr_v(outputs, labels, mtf)
    loss = jax.block_until_ready(loss)

    ref = jax.block_until_ready(_reference_loss(outputs, labels, mtf))
    np.testing.assert_allclose(np.asarray(loss), np.asarray(ref),
                               rtol=1e-5, atol=1e-5)

    print("KERNEL_OK")
</pallas_src>

<mosaic_0001>
module attributes {stable_mosaic.version = 11 : i64} {
  func.func @kernel(%arg0: i32, %arg1: memref<8x256xf32, #tpu.memory_space<vmem>>, %arg2: memref<8x256xf32, #tpu.memory_space<vmem>>, %arg3: memref<8x25xf32, #tpu.memory_space<vmem>>, %arg4: memref<1x256xf32, #tpu.memory_space<vmem>>, %arg5: memref<1x1x256xf32, #tpu.memory_space<vmem>>) attributes {dimension_semantics = [#tpu.dimension_semantics<parallel>], iteration_bounds = array<i64: 1>, scalar_prefetch = 0 : i64, scratch_operands = 0 : i64, tpu.core_type = #tpu.core_type<tc>, window_params = [{transform_indices = @transform_0, window_bounds = array<i64: 8, 256>}, {transform_indices = @transform_1, window_bounds = array<i64: 8, 256>}, {pipeline_mode = #tpu.pipeline_mode<synchronous>, transform_indices = @transform_2, window_bounds = array<i64: 8, 25>}, {pipeline_mode = #tpu.pipeline_mode<synchronous>, transform_indices = @transform_3, window_bounds = array<i64: 1, 256>}, {transform_indices = @transform_4, window_bounds = array<i64: 1, 1, 256>}]} {
    %c0 = arith.constant 0 : index
    %c0_0 = arith.constant 0 : index
    %0 = vector.load %arg3[%c0, %c0_0] : memref<8x25xf32, #tpu.memory_space<vmem>>, vector<8x25xf32>
    %1 = vector.extract_strided_slice %0 {offsets = [0, 0], sizes = [8, 1], strides = [1, 1]} : vector<8x25xf32> to vector<8x1xf32>
    %2 = vector.extract_strided_slice %0 {offsets = [0, 1], sizes = [8, 1], strides = [1, 1]} : vector<8x25xf32> to vector<8x1xf32>
    %3 = vector.extract_strided_slice %0 {offsets = [0, 2], sizes = [8, 1], strides = [1, 1]} : vector<8x25xf32> to vector<8x1xf32>
    %4 = vector.extract_strided_slice %0 {offsets = [0, 3], sizes = [8, 1], strides = [1, 1]} : vector<8x25xf32> to vector<8x1xf32>
    %5 = vector.extract_strided_slice %0 {offsets = [0, 4], sizes = [8, 1], strides = [1, 1]} : vector<8x25xf32> to vector<8x1xf32>
    %6 = vector.extract_strided_slice %0 {offsets = [0, 5], sizes = [8, 1], strides = [1, 1]} : vector<8x25xf32> to vector<8x1xf32>
    %7 = vector.extract_strided_slice %0 {offsets = [0, 6], sizes = [8, 1], strides = [1, 1]} : vector<8x25xf32> to vector<8x1xf32>
    %8 = vector.extract_strided_slice %0 {offsets = [0, 7], sizes = [8, 1], strides = [1, 1]} : vector<8x25xf32> to vector<8x1xf32>
    %9 = vector.extract_strided_slice %0 {offsets = [0, 8], sizes = [8, 1], strides = [1, 1]} : vector<8x25xf32> to vector<8x1xf32>
    %10 = vector.extract_strided_slice %0 {offsets = [0, 9], sizes = [8, 1], strides = [1, 1]} : vector<8x25xf32> to vector<8x1xf32>
    %11 = vector.extract_strided_slice %0 {offsets = [0, 10], sizes = [8, 1], strides = [1, 1]} : vector<8x25xf32> to vector<8x1xf32>
    %12 = vector.extract_strided_slice %0 {offsets = [0, 11], sizes = [8, 1], strides = [1, 1]} : vector<8x25xf32> to vector<8x1xf32>
    %13 = vector.extract_strided_slice %0 {offsets = [0, 12], sizes = [8, 1], strides = [1, 1]} : vector<8x25xf32> to vector<8x1xf32>
    %14 = vector.extract_strided_slice %0 {offsets = [0, 13], sizes = [8, 1], strides = [1, 1]} : vector<8x25xf32> to vector<8x1xf32>
    %15 = vector.extract_strided_slice %0 {offsets = [0, 14], sizes = [8, 1], strides = [1, 1]} : vector<8x25xf32> to vector<8x1xf32>
    %16 = vector.extract_strided_slice %0 {offsets = [0, 15], sizes = [8, 1], strides = [1, 1]} : vector<8x25xf32> to vector<8x1xf32>
    %17 = vector.extract_strided_slice %0 {offsets = [0, 16], sizes = [8, 1], strides = [1, 1]} : vector<8x25xf32> to vector<8x1xf32>
    %18 = vector.extract_strided_slice %0 {offsets = [0, 17], sizes = [8, 1], strides = [1, 1]} : vector<8x25xf32> to vector<8x1xf32>
    %19 = vector.extract_strided_slice %0 {offsets = [0, 18], sizes = [8, 1], strides = [1, 1]} : vector<8x25xf32> to vector<8x1xf32>
    %20 = vector.extract_strided_slice %0 {offsets = [0, 19], sizes = [8, 1], strides = [1, 1]} : vector<8x25xf32> to vector<8x1xf32>
    %21 = vector.extract_strided_slice %0 {offsets = [0, 20], sizes = [8, 1], strides = [1, 1]} : vector<8x25xf32> to vector<8x1xf32>
    %22 = vector.extract_strided_slice %0 {offsets = [0, 21], sizes = [8, 1], strides = [1, 1]} : vector<8x25xf32> to vector<8x1xf32>
    %23 = vector.extract_strided_slice %0 {offsets = [0, 22], sizes = [8, 1], strides = [1, 1]} : vector<8x25xf32> to vector<8x1xf32>
    %24 = vector.extract_strided_slice %0 {offsets = [0, 23], sizes = [8, 1], strides = [1, 1]} : vector<8x25xf32> to vector<8x1xf32>
    %25 = vector.extract_strided_slice %0 {offsets = [0, 24], sizes = [8, 1], strides = [1, 1]} : vector<8x25xf32> to vector<8x1xf32>
    %c0_1 = arith.constant 0 : index
    %c0_2 = arith.constant 0 : index
    %26 = vector.load %arg1[%c0_1, %c0_2] : memref<8x256xf32, #tpu.memory_space<vmem>>, vector<8x256xf32>
    %c0_3 = arith.constant 0 : index
    %c0_4 = arith.constant 0 : index
    %27 = vector.load %arg1[%c0_3, %c0_4] : memref<8x256xf32, #tpu.memory_space<vmem>>, vector<8x128xf32>
    %28 = tpu.concatenate %26, %27 in 1 : vector<8x256xf32>, vector<8x128xf32> -> vector<8x384xf32>
    %c0_5 = arith.constant 0 : index
    %c0_6 = arith.constant 0 : index
    %29 = vector.load %arg2[%c0_5, %c0_6] : memref<8x256xf32, #tpu.memory_space<vmem>>, vector<8x256xf32>
    %30 = vector.extract_strided_slice %28 {offsets = [0, 0], sizes = [8, 256], strides = [1, 1]} : vector<8x384xf32> to vector<8x256xf32>
    %31 = vector.broadcast %1 : vector<8x1xf32> to vector<8x256xf32>
    %32 = arith.mulf %31, %30 : vector<8x256xf32>
    %33 = vector.extract_strided_slice %28 {offsets = [0, 1], sizes = [8, 256], strides = [1, 1]} : vector<8x384xf32> to vector<8x256xf32>
    %34 = vector.broadcast %2 : vector<8x1xf32> to vector<8x256xf32>
    %35 = arith.mulf %34, %33 : vector<8x256xf32>
    %36 = arith.addf %32, %35 : vector<8x256xf32>
    %37 = vector.extract_strided_slice %28 {offsets = [0, 2], sizes = [8, 256], strides = [1, 1]} : vector<8x384xf32> to vector<8x256xf32>
    %38 = vector.broadcast %3 : vector<8x1xf32> to vector<8x256xf32>
    %39 = arith.mulf %38, %37 : vector<8x256xf32>
    %40 = arith.addf %36, %39 : vector<8x256xf32>
    %41 = vector.extract_strided_slice %28 {offsets = [0, 3], sizes = [8, 256], strides = [1, 1]} : vector<8x384xf32> to vector<8x256xf32>
    %42 = vector.broadcast %4 : vector<8x1xf32> to vector<8x256xf32>
    %43 = arith.mulf %42, %41 : vector<8x256xf32>
    %44 = arith.addf %40, %43 : vector<8x256xf32>
    %45 = vector.extract_strided_slice %28 {offsets = [0, 4], sizes = [8, 256], strides = [1, 1]} : vector<8x384xf32> to vector<8x256xf32>
    %46 = vector.broadcast %5 : vector<8x1xf32> to vector<8x256xf32>
    %47 = arith.mulf %46, %45 : vector<8x256xf32>
    %48 = arith.addf %44, %47 : vector<8x256xf32>
    %49 = vector.extract_strided_slice %28 {offsets = [0, 16], sizes = [8, 256], strides = [1, 1]} : vector<8x384xf32> to vector<8x256xf32>
    %50 = vector.broadcast %6 : vector<8x1xf32> to vector<8x256xf32>
    %51 = arith.mulf %50, %49 : vector<8x256xf32>
    %52 = arith.addf %48, %51 : vector<8x256xf32>
    %53 = vector.extract_strided_slice %28 {offsets = [0, 17], sizes = [8, 256], strides = [1, 1]} : vector<8x384xf32> to vector<8x256xf32>
    %54 = vector.broadcast %7 : vector<8x1xf32> to vector<8x256xf32>
    %55 = arith.mulf %54, %53 : vector<8x256xf32>
    %56 = arith.addf %52, %55 : vector<8x256xf32>
    %57 = vector.extract_strided_slice %28 {offsets = [0, 18], sizes = [8, 256], strides = [1, 1]} : vector<8x384xf32> to vector<8x256xf32>
    %58 = vector.broadcast %8 : vector<8x1xf32> to vector<8x256xf32>
    %59 = arith.mulf %58, %57 : vector<8x256xf32>
    %60 = arith.addf %56, %59 : vector<8x256xf32>
    %61 = vector.extract_strided_slice %28 {offsets = [0, 19], sizes = [8, 256], strides = [1, 1]} : vector<8x384xf32> to vector<8x256xf32>
    %62 = vector.broadcast %9 : vector<8x1xf32> to vector<8x256xf32>
    %63 = arith.mulf %62, %61 : vector<8x256xf32>
    %64 = arith.addf %60, %63 : vector<8x256xf32>
    %65 = vector.extract_strided_slice %28 {offsets = [0, 20], sizes = [8, 256], strides = [1, 1]} : vector<8x384xf32> to vector<8x256xf32>
    %66 = vector.broadcast %10 : vector<8x1xf32> to vector<8x256xf32>
    %67 = arith.mulf %66, %65 : vector<8x256xf32>
    %68 = arith.addf %64, %67 : vector<8x256xf32>
    %69 = vector.extract_strided_slice %28 {offsets = [0, 32], sizes = [8, 256], strides = [1, 1]} : vector<8x384xf32> to vector<8x256xf32>
    %70 = vector.broadcast %11 : vector<8x1xf32> to vector<8x256xf32>
    %71 = arith.mulf %70, %69 : vector<8x256xf32>
    %72 = arith.addf %68, %71 : vector<8x256xf32>
    %73 = vector.extract_strided_slice %28 {offsets = [0, 33], sizes = [8, 256], strides = [1, 1]} : vector<8x384xf32> to vector<8x256xf32>
    %74 = vector.broadcast %12 : vector<8x1xf32> to vector<8x256xf32>
    %75 = arith.mulf %74, %73 : vector<8x256xf32>
    %76 = arith.addf %72, %75 : vector<8x256xf32>
    %77 = vector.extract_strided_slice %28 {offsets = [0, 34], sizes = [8, 256], strides = [1, 1]} : vector<8x384xf32> to vector<8x256xf32>
    %78 = vector.broadcast %13 : vector<8x1xf32> to vector<8x256xf32>
    %79 = arith.mulf %78, %77 : vector<8x256xf32>
    %80 = arith.addf %76, %79 : vector<8x256xf32>
    %81 = vector.extract_strided_slice %28 {offsets = [0, 35], sizes = [8, 256], strides = [1, 1]} : vector<8x384xf32> to vector<8x256xf32>
    %82 = vector.broadcast %14 : vector<8x1xf32> to vector<8x256xf32>
    %83 = arith.mulf %82, %81 : vector<8x256xf32>
    %84 = arith.addf %80, %83 : vector<8x256xf32>
    %85 = vector.extract_strided_slice %28 {offsets = [0, 36], sizes = [8, 256], strides = [1, 1]} : vector<8x384xf32> to vector<8x256xf32>
    %86 = vector.broadcast %15 : vector<8x1xf32> to vector<8x256xf32>
    %87 = arith.mulf %86, %85 : vector<8x256xf32>
    %88 = arith.addf %84, %87 : vector<8x256xf32>
    %89 = vector.extract_strided_slice %28 {offsets = [0, 48], sizes = [8, 256], strides = [1, 1]} : vector<8x384xf32> to vector<8x256xf32>
    %90 = vector.broadcast %16 : vector<8x1xf32> to vector<8x256xf32>
    %91 = arith.mulf %90, %89 : vector<8x256xf32>
    %92 = arith.addf %88, %91 : vector<8x256xf32>
    %93 = vector.extract_strided_slice %28 {offsets = [0, 49], sizes = [8, 256], strides = [1, 1]} : vector<8x384xf32> to vector<8x256xf32>
    %94 = vector.broadcast %17 : vector<8x1xf32> to vector<8x256xf32>
    %95 = arith.mulf %94, %93 : vector<8x256xf32>
    %96 = arith.addf %92, %95 : vector<8x256xf32>
    %97 = vector.extract_strided_slice %28 {offsets = [0, 50], sizes = [8, 256], strides = [1, 1]} : vector<8x384xf32> to vector<8x256xf32>
    %98 = vector.broadcast %18 : vector<8x1xf32> to vector<8x256xf32>
    %99 = arith.mulf %98, %97 : vector<8x256xf32>
    %100 = arith.addf %96, %99 : vector<8x256xf32>
    %101 = vector.extract_strided_slice %28 {offsets = [0, 51], sizes = [8, 256], strides = [1, 1]} : vector<8x384xf32> to vector<8x256xf32>
    %102 = vector.broadcast %19 : vector<8x1xf32> to vector<8x256xf32>
    %103 = arith.mulf %102, %101 : vector<8x256xf32>
    %104 = arith.addf %100, %103 : vector<8x256xf32>
    %105 = vector.extract_strided_slice %28 {offsets = [0, 52], sizes = [8, 256], strides = [1, 1]} : vector<8x384xf32> to vector<8x256xf32>
    %106 = vector.broadcast %20 : vector<8x1xf32> to vector<8x256xf32>
    %107 = arith.mulf %106, %105 : vector<8x256xf32>
    %108 = arith.addf %104, %107 : vector<8x256xf32>
    %109 = vector.extract_strided_slice %28 {offsets = [0, 64], sizes = [8, 256], strides = [1, 1]} : vector<8x384xf32> to vector<8x256xf32>
    %110 = vector.broadcast %21 : vector<8x1xf32> to vector<8x256xf32>
    %111 = arith.mulf %110, %109 : vector<8x256xf32>
    %112 = arith.addf %108, %111 : vector<8x256xf32>
    %113 = vector.extract_strided_slice %28 {offsets = [0, 65], sizes = [8, 256], strides = [1, 1]} : vector<8x384xf32> to vector<8x256xf32>
    %114 = vector.broadcast %22 : vector<8x1xf32> to vector<8x256xf32>
    %115 = arith.mulf %114, %113 : vector<8x256xf32>
    %116 = arith.addf %112, %115 : vector<8x256xf32>
    %117 = vector.extract_strided_slice %28 {offsets = [0, 66], sizes = [8, 256], strides = [1, 1]} : vector<8x384xf32> to vector<8x256xf32>
    %118 = vector.broadcast %23 : vector<8x1xf32> to vector<8x256xf32>
    %119 = arith.mulf %118, %117 : vector<8x256xf32>
    %120 = arith.addf %116, %119 : vector<8x256xf32>
    %121 = vector.extract_strided_slice %28 {offsets = [0, 67], sizes = [8, 256], strides = [1, 1]} : vector<8x384xf32> to vector<8x256xf32>
    %122 = vector.broadcast %24 : vector<8x1xf32> to vector<8x256xf32>
    %123 = arith.mulf %122, %121 : vector<8x256xf32>
    %124 = arith.addf %120, %123 : vector<8x256xf32>
    %125 = vector.extract_strided_slice %28 {offsets = [0, 68], sizes = [8, 256], strides = [1, 1]} : vector<8x384xf32> to vector<8x256xf32>
    %126 = vector.broadcast %25 : vector<8x1xf32> to vector<8x256xf32>
    %127 = arith.mulf %126, %125 : vector<8x256xf32>
    %128 = arith.addf %124, %127 : vector<8x256xf32>
    %129 = arith.subf %128, %29 : vector<8x256xf32>
    %130 = math.absf %129 : vector<8x256xf32>
    %cst = arith.constant dense<0.000000e+00> : vector<256xf32>
    %131 = vector.multi_reduction <add>, %130, %cst [0] : vector<8x256xf32> to vector<256xf32>
    %132 = vector.shape_cast %131 : vector<256xf32> to vector<1x256xf32>
    %c0_7 = arith.constant 0 : index
    %c0_8 = arith.constant 0 : index
    %133 = vector.load %arg4[%c0_7, %c0_8] : memref<1x256xf32, #tpu.memory_space<vmem>>, vector<1x256xf32>
    %134 = arith.mulf %132, %133 : vector<1x256xf32>
    %c0_9 = arith.constant 0 : index
    %c0_10 = arith.constant 0 : index
    %c0_11 = arith.constant 0 : index
    %135 = vector.load %arg5[%c0_9, %c0_10, %c0_11] : memref<1x1x256xf32, #tpu.memory_space<vmem>>, vector<1x1x256xf32>
    %136 = vector.shape_cast %135 : vector<1x1x256xf32> to vector<1x256xf32>
    %137 = vector.shape_cast %134 : vector<1x256xf32> to vector<1x1x256xf32>
    tpu.vector_store %arg5[%c0_9, %c0_10, %c0_11], %137 {strides = array<i32>} : memref<1x1x256xf32, #tpu.memory_space<vmem>>, vector<1x1x256xf32>,
    return
  }
  func.func @transform_0(%arg0: i32) -> (i32, i32) {
    %c0_i32 = arith.constant 0 : i32
    %c0_i32_0 = arith.constant 0 : i32
    return %arg0, %c0_i32 : i32, i32
  }
  func.func @transform_1(%arg0: i32) -> (i32, i32) {
    %c0_i32 = arith.constant 0 : i32
    %c0_i32_0 = arith.constant 0 : i32
    return %arg0, %c0_i32 : i32, i32
  }
  func.func @transform_2(%arg0: i32) -> (i32, i32) {
    %c0_i32 = arith.constant 0 : i32
    %c0_i32_0 = arith.constant 0 : i32
    %c0_i32_1 = arith.constant 0 : i32
    return %c0_i32, %c0_i32_0 : i32, i32
  }
  func.func @transform_3(%arg0: i32) -> (i32, i32) {
    %c0_i32 = arith.constant 0 : i32
    %c0_i32_0 = arith.constant 0 : i32
    %c0_i32_1 = arith.constant 0 : i32
    return %c0_i32, %c0_i32_0 : i32, i32
  }
  func.func @transform_4(%arg0: i32) -> (i32, i32, i32) {
    %c0_i32 = arith.constant 0 : i32
    %c0_i32_0 = arith.constant 0 : i32
    %c0_i32_1 = arith.constant 0 : i32
    return %arg0, %c0_i32, %c0_i32_0 : i32, i32, i32
  }
}

</mosaic_0001>

<bundles_post_ra>
// kernel: tpu_custom_call.1
= control target key start
LH: loop header
LB: loop body
LE: loop exit
PB: predicated region body
PF: predicated region fallthrough
CT: control target
= control target key end

     0   :  { %9 = vsyncpa [#allocation3], 0  ;;  %s1067_s0 = inlined_call_operand.hbm [shape: f32[8,256], index: 0, kind: input, shape index: {}]   ;;  %s1068_s1 = inlined_call_operand.hbm [shape: f32[8,256], index: 1, kind: input, shape index: {}]   ;;  %s1069_s2 = inlined_call_operand.hbm [shape: f32[8,25], index: 2, kind: input, shape index: {}]   ;;  %s1070_s3 = inlined_call_operand.vmem [shape: f32[1,256], index: 3, kind: input, shape index: {}]   ;;  %s1071_s4 = inlined_call_operand.hbm [shape: f32[1,1,256], index: 4, kind: output, shape index: {}]  }
   0x1   :  { %10 = vsyncpa [#allocation6], 0  ;;  %s28_s17 = sshll.u32 %s1068_s1, 4  ;;  %s29_s17 = int_to_ptr.hbm [resolvable:$true] %s28_s17 }
   0x2   :  { %11 = vsyncpa [#allocation4], 0  ;;  %s858_s18 = smov [#allocation5]   ;;  %s17_s22 = sshll.u32 %s1067_s0, 4  ;;  %s18_s22 = int_to_ptr.hbm [resolvable:$true] %s17_s22 }
   0x3   :  { %s30_s19 = sshll.u32 %s858_s18, 4  ;;  %s859_s23 = smov [#allocation2]   ;;  %s31_s19 = int_to_ptr.vmem [resolvable:$true] %s30_s19 }
   0x4   :  { %33 = dma.hbm_to_vmem [thread:$0]  %s29_s17, 256, %s31_s19, [#allocation6]  }
   0x5   :  { %s19_s24 = sshll.u32 %s859_s23, 4  ;;  %s39_s27 = sshll.u32 %s1069_s2, 4  ;;  %s20_s24 = int_to_ptr.vmem [resolvable:$true] %s19_s24  ;;  %s40_s27 = int_to_ptr.hbm [resolvable:$true] %s39_s27 }
   0x6   :  { %22 = dma.hbm_to_vmem [thread:$0]  %s18_s22, 256, %s20_s24, [#allocation3]  }
   0x7   :  { %s860_s1 = smov [#allocation7]  }
   0x8   :  { %s41_s28 = sshll.u32 %s860_s1, 4  ;;  %s42_s28 = int_to_ptr.vmem [resolvable:$true] %s41_s28 }
   0x9   :  { %44 = dma.hbm_to_vmem [thread:$0]  %s40_s27, 128, %s42_s28, [#allocation6]  }
   0xa   :  { %852 = dma.done.wait [#allocation3], 256  }
   0xb   :  { %853 = vsyncadd [#allocation3], 4294967040 }
   0xc   :  { %854 = dma.done.wait [#allocation6], 384  }
   0xd   :  { %855 = vsyncadd [#allocation6], 4294966912  ;;  %v861_v0 = vmov 3   ;;  %v862_v1 = vmov 0   ;;  %v863_v2 = vmov 2   ;;  %v945_v3 = vld [vmem:[#allocation7] sm:$0xff] }
   0xe   :  { %733 = vset.pattern.permute.xlu1 %v861_v0  ;;  %730 = vset.pattern.permute.xlu0 %v862_v1  ;;  %v864_v4 = vmov 1   ;;  %v865_v5 = vmov 4   ;;  %v866_v6 = vmov 5   ;;  %v867_v7 = vmov 6   ;;  %v958_v12 = vld [vmem:[#allocation2] sm:$0xff]  ;;  %s872_s0 = smov 126  }
   0xf   :  { %732 = vset.pattern.permute.xlu2 %v863_v2  ;;  %119 = vperm.xlu1 %733, %v945_v3   ;;  %v868_v8 = vmov 7   ;;  %v869_v9 = vmov 8   ;;  %v870_v10 = vmov 9   ;;  %v871_v11 = vmov 10   ;;  %v962_v16 = vld [vmem:[#allocation2 + $0x8] sm:$0xff]  ;;  %s873_s2 = smov 125  }
  0x10   :  { %67 = vperm.xlu0 %730, %v945_v3   ;;  %96 = vperm.xlu2 %732, %v945_v3   ;;  %v874_v20 = vmov 11   ;;  %s875_s29 = smov 124   ;;  %s876_s30 = smov 127   ;;  %vm111_vm0 = vcmask 1031168   ;;  %vm134_vm1 = vcmask 1022976   ;;  %vm88_vm2 = vcmask 1039360  }
  0x11   :  { %s877_s5 = smov 111   ;;  %s878_s6 = smov 109   ;;  %v883_v61 = vmov 12   ;;  %vm157_vm3 = vcmask 1014784   ;;  %vm180_vm4 = vcmask 916480   ;;  %vm203_vm5 = vcmask 908288  }
  0x12   :  { %s879_s7 = smov 96   ;;  %s880_s8 = smov 112   ;;  %vm226_vm6 = vcmask 900096   ;;  %vm249_vm7 = vcmask 891904   ;;  %vm272_vm8 = vcmask 883712   ;;  %vm295_vm9 = vcmask 785408  }
  0x13   :  { %s881_s9 = smov 110   ;;  %s882_s10 = smov 108   ;;  %vm318_vm10 = vcmask 777216   ;;  %vm341_vm11 = vcmask 769024   ;;  %vm364_vm12 = vcmask 760832   ;;  %vm387_vm13 = vcmask 752640  }
  0x14   :  { %s884_s11 = smov 95   ;;  %s886_s12 = smov 94   ;;  %vm410_vm14 = vcmask 654336   ;;  %vm433_vm15 = vcmask 646144  }
  0x15   :  { %s888_s13 = smov 93   ;;  %s890_s14 = smov 92  }
  0x16   :  { %s892_s15 = smov 80   ;;  %s896_s16 = smov 79  }
  0x17   :  { %s902_s17 = smov 78   ;;  %s903_s18 = smov 77  }
  0x18   :  { %731 = vset.pattern.permute.xlu0 %v864_v4  ;;  %734 = vset.pattern.permute.xlu2 %v865_v5  ;;  %s904_s19 = smov 76   ;;  %s905_s20 = smov 64  }
  0x19   :  { %73 = vperm.xlu0 %731, %v945_v3   ;;  %142 = vperm.xlu2 %734, %v945_v3   ;;  %s906_s21 = smov 63   ;;  %s907_s22 = smov 62  }
  0x1a   :  { %s908_s23 = smov 61   ;;  %s909_s24 = smov 60  }
  0x1b   :  { %s910_s27 = smov [#allocation8]  }
  0x1c   :  { %s664_s1 = sshll.u32 %s910_s27, 4  ;;  %s665_s1 = int_to_ptr.vmem [resolvable:$true] %s664_s1 }
  0x21   :  { %735 = vset.pattern.permute.xlu0 %v866_v6  ;;  %736 = vset.pattern.permute.xlu2 %v867_v7 }
  0x22   :  { %165 = vperm.xlu0 %735, %v945_v3   ;;  %188 = vperm.xlu2 %736, %v945_v3  }
  0x2a   :  { %737 = vset.pattern.permute.xlu0 %v868_v8  ;;  %738 = vset.pattern.permute.xlu2 %v869_v9 }
  0x2b   :  { %211 = vperm.xlu0 %737, %v945_v3   ;;  %234 = vperm.xlu2 %738, %v945_v3  }
  0x33   :  { %739 = vset.pattern.permute.xlu0 %v870_v10  ;;  %740 = vset.pattern.permute.xlu2 %v871_v11 }
  0x34   :  { %257 = vperm.xlu0 %739, %v945_v3   ;;  %280 = vperm.xlu2 %740, %v945_v3  }
  0x3c   :  { %741 = vset.pattern.permute.xlu0 %v874_v20  ;;  %742 = vset.pattern.permute.xlu2 %v883_v61 }
  0x6a   :  { %v97_v13 = vpop.permute.xlu2 %96 }
  0x6b   :  { %v99_v14 = vmul.f32 %v97_v13, %v958_v12  ;;  %v100_v27 = vmul.f32 %v97_v13, %v962_v16 }
  0x6d   :  { %109 = vrot.lane.b32.xlu0 %v99_v14, %s872_s0 }
  0x73   :  { %v143_v15 = vpop.permute.xlu2 %142 }
  0x74   :  { %v145_v22 = vmul.f32 %v143_v15, %v958_v12  ;;  %v146_v35 = vmul.f32 %v143_v15, %v962_v16 }
  0x7c   :  { %v189_v21 = vpop.permute.xlu2 %188 }
  0x7d   :  { %v191_v26 = vmul.f32 %v189_v21, %v958_v12  ;;  %v192_v39 = vmul.f32 %v189_v21, %v962_v16 }
  0x81   :  { %v120_v17 = vpop.permute.xlu1 %119 }
  0x82   :  { %v964_v18 = vpop.permute.xlu0 %67  ;;  %v123_v19 = vmul.f32 %v120_v17, %v962_v16  ;;  %v122_v30 = vmul.f32 %v120_v17, %v958_v12 }
  0x83   :  { %v70_v56 = vmul.f32 %v964_v18, %v958_v12  ;;  %v71_v57 = vmul.f32 %v964_v18, %v962_v16 }
  0x84   :  { %130 = vrot.lane.b32.xlu0 %v123_v19, %s873_s2 }
  0x85   :  { %v235_v28 = vpop.permute.xlu2 %234 }
  0x86   :  { %v237_v29 = vmul.f32 %v235_v28, %v958_v12  ;;  %v238_v43 = vmul.f32 %v235_v28, %v962_v16 }
  0x8b   :  { %v74_v23 = vpop.permute.xlu0 %73 }
  0x8c   :  { %v76_v24 = vmul.f32 %v74_v23, %v958_v12  ;;  %151 = vrot.lane.b32.xlu0 %v145_v22, %s875_s29  ;;  %v77_v25 = vmul.f32 %v74_v23, %v962_v16 }
  0x8e   :  { %86 = vrot.lane.b32.xlu2 %v76_v24, %s876_s30  ;;  %82 = vrot.lane.b32.xlu1 %v76_v24, %s876_s30  ;;  %v281_v31 = vpop.permute.xlu2 %280 }
  0x8f   :  { %v283_v32 = vmul.f32 %v281_v31, %v958_v12  ;;  %v284_v49 = vmul.f32 %v281_v31, %v962_v16 }
  0x94   :  { %197 = vrot.lane.b32.xlu0 %v191_v26, %s877_s5  ;;  %v166_v33 = vpop.permute.xlu0 %165 }
  0x95   :  { %v169_v34 = vmul.f32 %v166_v33, %v962_v16  ;;  %v168_v36 = vmul.f32 %v166_v33, %v958_v12 }
  0x96   :  { %107 = vrot.lane.b32.xlu2 %v100_v27, %s872_s0  ;;  %84 = vrot.lane.b32.xlu1 %v77_v25, %s876_s30 }
  0x9c   :  { %243 = vrot.lane.b32.xlu0 %v237_v29, %s878_s6 }
  0x9d   :  { %v212_v37 = vpop.permute.xlu0 %211 }
  0x9e   :  { %128 = vrot.lane.b32.xlu2 %v122_v30, %s873_s2  ;;  %105 = vrot.lane.b32.xlu1 %v99_v14, %s872_s0  ;;  %v215_v38 = vmul.f32 %v212_v37, %v962_v16  ;;  %v214_v41 = vmul.f32 %v212_v37, %v958_v12 }
  0xa4   :  { %289 = vrot.lane.b32.xlu0 %v283_v32, %s879_s7 }
  0xa6   :  { %155 = vrot.lane.b32.xlu2 %v145_v22, %s875_s29  ;;  %132 = vrot.lane.b32.xlu1 %v122_v30, %s873_s2  ;;  %v258_v40 = vpop.permute.xlu0 %257  ;;  %s666_s2 = sshll.u32 %s1071_s4, 4  ;;  %s667_s2 = int_to_ptr.hbm [resolvable:$true] %s666_s2 }
  0xa7   :  { %v261_v42 = vmul.f32 %v258_v40, %v962_v16  ;;  %v260_v44 = vmul.f32 %v258_v40, %v958_v12 }
  0xac   :  { %303 = vperm.xlu0 %741, %v945_v3  }
  0xae   :  { %153 = vrot.lane.b32.xlu1 %v146_v35, %s875_s29  ;;  %176 = vrot.lane.b32.xlu2 %v169_v34, %s880_s8 }
  0xb6   :  { %201 = vrot.lane.b32.xlu2 %v191_v26, %s877_s5  ;;  %174 = vrot.lane.b32.xlu1 %v168_v36, %s880_s8 }
  0xbe   :  { %178 = vrot.lane.b32.xlu1 %v168_v36, %s880_s8  ;;  %222 = vrot.lane.b32.xlu2 %v215_v38, %s881_s9 }
  0xc6   :  { %199 = vrot.lane.b32.xlu1 %v192_v39, %s877_s5  ;;  %247 = vrot.lane.b32.xlu2 %v237_v29, %s878_s6 }
  0xce   :  { %220 = vrot.lane.b32.xlu1 %v214_v41, %s881_s9  ;;  %268 = vrot.lane.b32.xlu2 %v261_v42, %s882_s10 }
  0xd6   :  { %224 = vrot.lane.b32.xlu1 %v214_v41, %s881_s9  ;;  %293 = vrot.lane.b32.xlu2 %v283_v32, %s879_s7 }
  0xde   :  { %245 = vrot.lane.b32.xlu1 %v238_v43, %s878_s6 }
  0xdf   :  { %v110_v46 = vpop.permute.xlu0 %109 }
  0xe6   :  { %266 = vrot.lane.b32.xlu1 %v260_v44, %s882_s10 }
  0xe8   :  { %v87_v45 = vpop.permute.xlu2 %86 }
  0xee   :  { %270 = vrot.lane.b32.xlu1 %v260_v44, %s882_s10 }
  0xf0   :  { %v108_v47 = vpop.permute.xlu2 %107 }
  0xf1   :  { %v113_v48 = vsel %vm111_vm0, %v108_v47, %v110_v46 }
  0xf6   :  { %291 = vrot.lane.b32.xlu1 %v284_v49, %s879_s7  ;;  %v131_v50 = vpop.permute.xlu0 %130 }
  0xf8   :  { %v129_v51 = vpop.permute.xlu2 %128 }
  0xf9   :  { %v135_v52 = vsel %vm134_vm1, %v129_v51, %v131_v50 }
  0xfe   :  { %v152_v53 = vpop.permute.xlu0 %151 }
 0x100   :  { %v83_v54 = vpop.permute.xlu1 %82  ;;  %v156_v11 = vpop.permute.xlu2 %155 }
 0x106   :  { %v198_v55 = vpop.permute.xlu0 %197 }
 0x108   :  { %v85_v58 = vpop.permute.xlu1 %84  ;;  %v177_v22 = vpop.permute.xlu2 %176 }
 0x109   :  { %v89_v59 = vsel %vm88_vm2, %v83_v54, %v85_v58  ;;  %v90_v60 = vsel %vm88_vm2, %v85_v58, %v87_v45  ;;  %vm502_vm2 = vcmask 621568  }
 0x10a   :  { %v93_v62 = vadd.f32 %v89_v59, %v70_v56  ;;  %v94_v63 = vadd.f32 %v90_v60, %v71_v57  ;;  %v885_v59 = vmov 13  }
 0x10b   :  { %743 = vset.pattern.permute.xlu0 %v885_v59 }
 0x10c   :  { %v117_v0 = vadd.f32 %v113_v48, %v94_v63 }
 0x10e   :  { %v244_v1 = vpop.permute.xlu0 %243 }
 0x110   :  { %v106_v2 = vpop.permute.xlu1 %105  ;;  %v202_v29 = vpop.permute.xlu2 %201 }
 0x111   :  { %v112_v4 = vsel %vm111_vm0, %v106_v2, %v108_v47  ;;  %vm456_vm0 = vcmask 637952  }
 0x112   :  { %v116_v5 = vadd.f32 %v112_v4, %v93_v62 }
 0x114   :  { %v139_v6 = vadd.f32 %v135_v52, %v116_v5 }
 0x116   :  { %v290_v7 = vpop.permute.xlu0 %289 }
 0x118   :  { %v133_v8 = vpop.permute.xlu1 %132  ;;  %v223_v35 = vpop.permute.xlu2 %222 }
 0x119   :  { %v136_v9 = vsel %vm134_vm1, %v131_v50, %v133_v8  ;;  %vm479_vm1 = vcmask 629760  }
 0x11a   :  { %v140_v10 = vadd.f32 %v136_v9, %v117_v0  ;;  %v887_v9 = vmov 14  }
 0x11e   :  { %v304_v13 = vpop.permute.xlu0 %303 }
 0x11f   :  { %v306_v14 = vmul.f32 %v304_v13, %v958_v12  ;;  %v307_v15 = vmul.f32 %v304_v13, %v962_v16 }
 0x120   :  { %v154_v17 = vpop.permute.xlu1 %153  ;;  %v248_v42 = vpop.permute.xlu2 %247 }
 0x121   :  { %v158_v18 = vsel %vm157_vm3, %v152_v53, %v154_v17  ;;  %v159_v19 = vsel %vm157_vm3, %v154_v17, %v156_v11  ;;  %314 = vrot.lane.b32.xlu2 %v307_v15, %s884_s11  ;;  %312 = vrot.lane.b32.xlu1 %v306_v14, %s884_s11  ;;  %vm525_vm3 = vcmask 523264  }
 0x122   :  { %v162_v20 = vadd.f32 %v158_v18, %v139_v6  ;;  %v163_v21 = vadd.f32 %v159_v19, %v140_v10  ;;  %v889_v19 = vmov 15  }
 0x128   :  { %v175_v23 = vpop.permute.xlu1 %174  ;;  %v269_v48 = vpop.permute.xlu2 %268 }
 0x129   :  { %v181_v24 = vsel %vm180_vm4, %v175_v23, %v177_v22  ;;  %326 = vperm.xlu2 %742, %v945_v3   ;;  %316 = vrot.lane.b32.xlu1 %v306_v14, %s884_s11 }
 0x12a   :  { %v185_v25 = vadd.f32 %v181_v24, %v162_v20 }
 0x130   :  { %v179_v26 = vpop.permute.xlu1 %178 }
 0x131   :  { %v182_v27 = vsel %vm180_vm4, %v177_v22, %v179_v26  ;;  %744 = vset.pattern.permute.xlu2 %v887_v9  ;;  %vm548_vm4 = vcmask 515072  }
 0x132   :  { %v186_v28 = vadd.f32 %v182_v27, %v163_v21 }
 0x138   :  { %v200_v30 = vpop.permute.xlu1 %199 }
 0x139   :  { %v204_v31 = vsel %vm203_vm5, %v198_v55, %v200_v30  ;;  %v205_v32 = vsel %vm203_vm5, %v200_v30, %v202_v29  ;;  %v294_v55 = vpop.permute.xlu2 %293  ;;  %vm571_vm5 = vcmask 506880  }
 0x13a   :  { %v208_v33 = vadd.f32 %v204_v31, %v185_v25  ;;  %v209_v34 = vadd.f32 %v205_v32, %v186_v28 }
 0x140   :  { %v221_v36 = vpop.permute.xlu1 %220 }
 0x141   :  { %v227_v37 = vsel %vm226_vm6, %v221_v36, %v223_v35 }
 0x142   :  { %v231_v38 = vadd.f32 %v227_v37, %v208_v33  ;;  %v891_v33 = vmov 16  }
 0x148   :  { %v225_v39 = vpop.permute.xlu1 %224 }
 0x149   :  { %v228_v40 = vsel %vm226_vm6, %v223_v35, %v225_v39  ;;  %vm594_vm6 = vcmask 498688  }
 0x14a   :  { %v232_v41 = vadd.f32 %v228_v40, %v209_v34 }
 0x150   :  { %v246_v43 = vpop.permute.xlu1 %245 }
 0x151   :  { %v250_v44 = vsel %vm249_vm7, %v244_v1, %v246_v43  ;;  %v251_v45 = vsel %vm249_vm7, %v246_v43, %v248_v42  ;;  %v894_v43 = vmov 18   ;;  %vm617_vm7 = vcmask 490496  }
 0x152   :  { %v254_v46 = vadd.f32 %v250_v44, %v231_v38  ;;  %v255_v47 = vadd.f32 %v251_v45, %v232_v41  ;;  %v893_v41 = vmov 17   ;;  %748 = vset.pattern.permute.xlu1 %v894_v43  ;;  %v895_v45 = vmov 19  }
 0x158   :  { %v267_v49 = vpop.permute.xlu1 %266 }
 0x159   :  { %v273_v50 = vsel %vm272_vm8, %v267_v49, %v269_v48 }
 0x15a   :  { %v277_v51 = vadd.f32 %v273_v50, %v254_v46 }
 0x160   :  { %v271_v52 = vpop.permute.xlu1 %270 }
 0x161   :  { %v274_v53 = vsel %vm272_vm8, %v269_v48, %v271_v52  ;;  %v897_v52 = vmov 22   ;;  %vm651_vm8 = vcmask 1040384  }
 0x162   :  { %v278_v54 = vadd.f32 %v274_v53, %v255_v47  ;;  %v898_v53 = vmov 21  }
 0x168   :  { %v292_v56 = vpop.permute.xlu1 %291 }
 0x169   :  { %v296_v57 = vsel %vm295_vm9, %v290_v7, %v292_v56  ;;  %v297_v58 = vsel %vm295_vm9, %v292_v56, %v294_v55 }
 0x16a   :  { %v300_v60 = vadd.f32 %v296_v57, %v277_v51  ;;  %v301_v61 = vadd.f32 %v297_v58, %v278_v54  ;;  %v899_v54 = vmov 20  }
 0x17b   :  { %v315_v62 = vpop.permute.xlu2 %314 }
 0x183   :  { %v327_v63 = vpop.permute.xlu2 %326 }
 0x184   :  { %v329_v0 = vmul.f32 %v327_v63, %v958_v12  ;;  %v330_v1 = vmul.f32 %v327_v63, %v962_v16 }
 0x186   :  { %339 = vrot.lane.b32.xlu2 %v329_v0, %s886_s12  ;;  %335 = vrot.lane.b32.xlu0 %v329_v0, %s886_s12 }
 0x187   :  { %337 = vrot.lane.b32.xlu1 %v330_v1, %s886_s12 }
 0x18e   :  { %349 = vperm.xlu0 %743, %v945_v3  }
 0x193   :  { %v313_v2 = vpop.permute.xlu1 %312 }
 0x194   :  { %v319_v4 = vsel %vm318_vm10, %v313_v2, %v315_v62 }
 0x195   :  { %v323_v5 = vadd.f32 %v319_v4, %v300_v60  ;;  %v900_v60 = vmov 24  }
 0x196   :  { %745 = vset.pattern.permute.xlu0 %v889_v19 }
 0x19b   :  { %v317_v6 = vpop.permute.xlu1 %316 }
 0x19c   :  { %v320_v7 = vsel %vm318_vm10, %v315_v62, %v317_v6 }
 0x19d   :  { %v324_v8 = vadd.f32 %v320_v7, %v301_v61  ;;  %v901_v61 = vmov 23  }
 0x1e0   :  { %v340_v20 = vpop.permute.xlu2 %339 }
 0x1f8   :  { %v336_v10 = vpop.permute.xlu0 %335 }
 0x1f9   :  { %v338_v11 = vpop.permute.xlu1 %337 }
 0x1fa   :  { %v342_v13 = vsel %vm341_vm11, %v336_v10, %v338_v11  ;;  %v343_v28 = vsel %vm341_vm11, %v338_v11, %v340_v20 }
 0x1fb   :  { %v346_v14 = vadd.f32 %v342_v13, %v323_v5  ;;  %v347_v29 = vadd.f32 %v343_v28, %v324_v8 }
 0x200   :  { %v350_v15 = vpop.permute.xlu0 %349 }
 0x201   :  { %v352_v17 = vmul.f32 %v350_v15, %v958_v12  ;;  %v353_v18 = vmul.f32 %v350_v15, %v962_v16 }
 0x203   :  { %360 = vrot.lane.b32.xlu2 %v353_v18, %s888_s13  ;;  %358 = vrot.lane.b32.xlu1 %v352_v17, %s888_s13 }
 0x20b   :  { %372 = vperm.xlu2 %744, %v945_v3   ;;  %362 = vrot.lane.b32.xlu1 %v352_v17, %s888_s13 }
 0x213   :  { %746 = vset.pattern.permute.xlu2 %v891_v33 }
 0x25d   :  { %v361_v21 = vpop.permute.xlu2 %360 }
 0x265   :  { %v373_v22 = vpop.permute.xlu2 %372 }
 0x266   :  { %v375_v23 = vmul.f32 %v373_v22, %v958_v12  ;;  %v376_v24 = vmul.f32 %v373_v22, %v962_v16 }
 0x268   :  { %385 = vrot.lane.b32.xlu2 %v375_v23, %s890_s14  ;;  %381 = vrot.lane.b32.xlu0 %v375_v23, %s890_s14 }
 0x269   :  { %383 = vrot.lane.b32.xlu1 %v376_v24, %s890_s14 }
 0x270   :  { %395 = vperm.xlu0 %745, %v945_v3  }
 0x275   :  { %v359_v25 = vpop.permute.xlu1 %358 }
 0x276   :  { %v365_v26 = vsel %vm364_vm12, %v359_v25, %v361_v21 }
 0x277   :  { %v369_v27 = vadd.f32 %v365_v26, %v346_v14 }
 0x278   :  { %747 = vset.pattern.permute.xlu0 %v893_v41 }
 0x27d   :  { %v363_v30 = vpop.permute.xlu1 %362 }
 0x27e   :  { %v366_v31 = vsel %vm364_vm12, %v361_v21, %v363_v30 }
 0x27f   :  { %v370_v32 = vadd.f32 %v366_v31, %v347_v29 }
 0x2c2   :  { %v386_v42 = vpop.permute.xlu2 %385 }
 0x2da   :  { %v382_v34 = vpop.permute.xlu0 %381 }
 0x2db   :  { %v384_v35 = vpop.permute.xlu1 %383 }
 0x2dc   :  { %v388_v36 = vsel %vm387_vm13, %v382_v34, %v384_v35  ;;  %v389_v55 = vsel %vm387_vm13, %v384_v35, %v386_v42 }
 0x2dd   :  { %v392_v37 = vadd.f32 %v388_v36, %v369_v27  ;;  %v393_v56 = vadd.f32 %v389_v55, %v370_v32 }
 0x2e2   :  { %v396_v38 = vpop.permute.xlu0 %395 }
 0x2e3   :  { %v398_v39 = vmul.f32 %v396_v38, %v958_v12  ;;  %v399_v40 = vmul.f32 %v396_v38, %v962_v16 }
 0x2e5   :  { %406 = vrot.lane.b32.xlu2 %v399_v40, %s892_s15  ;;  %404 = vrot.lane.b32.xlu1 %v398_v39, %s892_s15 }
 0x2ed   :  { %418 = vperm.xlu2 %746, %v945_v3   ;;  %408 = vrot.lane.b32.xlu1 %v398_v39, %s892_s15 }
 0x2f5   :  { %749 = vset.pattern.permute.xlu2 %v895_v45 }
 0x33f   :  { %v407_v44 = vpop.permute.xlu2 %406 }
 0x347   :  { %v419_v46 = vpop.permute.xlu2 %418 }
 0x348   :  { %v421_v47 = vmul.f32 %v419_v46, %v958_v12  ;;  %v422_v48 = vmul.f32 %v419_v46, %v962_v16 }
 0x34a   :  { %431 = vrot.lane.b32.xlu2 %v421_v47, %s896_s16  ;;  %427 = vrot.lane.b32.xlu0 %v421_v47, %s896_s16 }
 0x34b   :  { %429 = vrot.lane.b32.xlu1 %v422_v48, %s896_s16 }
 0x352   :  { %441 = vperm.xlu0 %747, %v945_v3   ;;  %487 = vperm.xlu2 %749, %v945_v3  }
 0x353   :  { %464 = vperm.xlu1 %748, %v945_v3  }
 0x357   :  { %v405_v49 = vpop.permute.xlu1 %404 }
 0x358   :  { %v411_v50 = vsel %vm410_vm14, %v405_v49, %v407_v44 }
 0x359   :  { %v415_v51 = vadd.f32 %v411_v50, %v392_v37 }
 0x35a   :  { %752 = vset.pattern.permute.xlu0 %v897_v52  ;;  %751 = vset.pattern.permute.xlu2 %v898_v53 }
 0x35b   :  { %750 = vset.pattern.permute.xlu1 %v899_v54  ;;  %556 = vperm.xlu0 %752, %v945_v3  }
 0x35c   :  { %510 = vperm.xlu1 %750, %v945_v3   ;;  %533 = vperm.xlu2 %751, %v945_v3  }
 0x35f   :  { %v409_v57 = vpop.permute.xlu1 %408 }
 0x360   :  { %v412_v58 = vsel %vm410_vm14, %v407_v44, %v409_v57 }
 0x361   :  { %v416_v59 = vadd.f32 %v412_v58, %v393_v56 }
 0x363   :  { %755 = vset.pattern.permute.xlu0 %v900_v60 }
 0x364   :  { %753 = vset.pattern.permute.xlu1 %v901_v61  ;;  %754 = vset.pattern.permute.xlu2 %v900_v60 }
 0x365   :  { %579 = vperm.xlu1 %753, %v945_v3   ;;  %602 = vperm.xlu2 %754, %v945_v3  }
 0x3a4   :  { %v432_v63 = vpop.permute.xlu2 %431 }
 0x3ac   :  { %v488_v11 = vpop.permute.xlu2 %487 }
 0x3ad   :  { %v490_v13 = vmul.f32 %v488_v11, %v958_v12  ;;  %v491_v14 = vmul.f32 %v488_v11, %v962_v16 }
 0x3b6   :  { %v534_v19 = vpop.permute.xlu2 %533 }
 0x3b7   :  { %v536_v20 = vmul.f32 %v534_v19, %v958_v12  ;;  %v537_v21 = vmul.f32 %v534_v19, %v962_v16  ;;  %v63_v19 = vld [vmem:[#allocation5] sm:$0xff] }
 0x3bc   :  { %v428_v62 = vpop.permute.xlu0 %427 }
 0x3bd   :  { %v430_v0 = vpop.permute.xlu1 %429 }
 0x3be   :  { %v434_v1 = vsel %vm433_vm15, %v428_v62, %v430_v0  ;;  %v435_v2 = vsel %vm433_vm15, %v430_v0, %v432_v63 }
 0x3bf   :  { %v1039_v4 = vadd.f32 %v434_v1, %v415_v51  ;;  %v1041_v5 = vadd.f32 %v435_v2, %v416_v59  ;;  %v603_v28 = vpop.permute.xlu2 %602 }
 0x3c0   :  { %v605_v29 = vmul.f32 %v603_v28, %v958_v12  ;;  %v606_v30 = vmul.f32 %v603_v28, %v962_v16 }
 0x3c4   :  { %v442_v6 = vpop.permute.xlu0 %441 }
 0x3c5   :  { %v444_v7 = vmul.f32 %v442_v6, %v958_v12  ;;  %v445_v8 = vmul.f32 %v442_v6, %v962_v16  ;;  %v465_v3 = vpop.permute.xlu1 %464 }
 0x3c6   :  { %v467_v9 = vmul.f32 %v465_v3, %v958_v12  ;;  %v468_v10 = vmul.f32 %v465_v3, %v962_v16 }
 0x3c7   :  { %454 = vrot.lane.b32.xlu2 %v444_v7, %s902_s17  ;;  %450 = vrot.lane.b32.xlu0 %v444_v7, %s902_s17 }
 0x3c8   :  { %452 = vrot.lane.b32.xlu1 %v445_v8, %s902_s17 }
 0x3cd   :  { %v557_v22 = vpop.permute.xlu0 %556 }
 0x3ce   :  { %v511_v15 = vpop.permute.xlu1 %510  ;;  %v559_v23 = vmul.f32 %v557_v22, %v958_v12  ;;  %v560_v24 = vmul.f32 %v557_v22, %v962_v16 }
 0x3cf   :  { %477 = vrot.lane.b32.xlu2 %v467_v9, %s903_s18  ;;  %473 = vrot.lane.b32.xlu0 %v467_v9, %s903_s18  ;;  %v513_v17 = vmul.f32 %v511_v15, %v958_v12  ;;  %v514_v18 = vmul.f32 %v511_v15, %v962_v16 }
 0x3d0   :  { %475 = vrot.lane.b32.xlu1 %v468_v10, %s903_s18 }
 0x3d7   :  { %500 = vrot.lane.b32.xlu2 %v490_v13, %s904_s19  ;;  %496 = vrot.lane.b32.xlu0 %v490_v13, %s904_s19  ;;  %v580_v25 = vpop.permute.xlu1 %579 }
 0x3d8   :  { %498 = vrot.lane.b32.xlu1 %v491_v14, %s904_s19  ;;  %v582_v26 = vmul.f32 %v580_v25, %v958_v12  ;;  %v583_v27 = vmul.f32 %v580_v25, %v962_v16 }
 0x3df   :  { %523 = vrot.lane.b32.xlu2 %v513_v17, %s905_s20  ;;  %519 = vrot.lane.b32.xlu0 %v513_v17, %s905_s20 }
 0x3e0   :  { %521 = vrot.lane.b32.xlu1 %v514_v18, %s905_s20 }
 0x3e7   :  { %546 = vrot.lane.b32.xlu2 %v536_v20, %s906_s21  ;;  %542 = vrot.lane.b32.xlu0 %v536_v20, %s906_s21  ;;  %v64_v20 = vld [vmem:[#allocation5 + $0x8] sm:$0xff] }
 0x3e8   :  { %544 = vrot.lane.b32.xlu1 %v537_v21, %s906_s21 }
 0x3ef   :  { %569 = vrot.lane.b32.xlu2 %v559_v23, %s907_s22  ;;  %565 = vrot.lane.b32.xlu0 %v559_v23, %s907_s22 }
 0x3f0   :  { %567 = vrot.lane.b32.xlu1 %v560_v24, %s907_s22 }
 0x3f7   :  { %592 = vrot.lane.b32.xlu2 %v582_v26, %s908_s23  ;;  %588 = vrot.lane.b32.xlu0 %v582_v26, %s908_s23 }
 0x3f8   :  { %590 = vrot.lane.b32.xlu1 %v583_v27, %s908_s23 }
 0x3ff   :  { %615 = vrot.lane.b32.xlu2 %v605_v29, %s909_s24  ;;  %611 = vrot.lane.b32.xlu0 %v605_v29, %s909_s24 }
 0x400   :  { %613 = vrot.lane.b32.xlu1 %v606_v30, %s909_s24 }
 0x421   :  { %v455_v31 = vpop.permute.xlu2 %454 }
 0x429   :  { %v478_v32 = vpop.permute.xlu2 %477 }
 0x431   :  { %v501_v35 = vpop.permute.xlu2 %500 }
 0x439   :  { %v451_v33 = vpop.permute.xlu0 %450  ;;  %v524_v39 = vpop.permute.xlu2 %523 }
 0x43a   :  { %v453_v34 = vpop.permute.xlu1 %452 }
 0x43b   :  { %v457_v47 = vsel %vm456_vm0, %v451_v33, %v453_v34  ;;  %v458_v48 = vsel %vm456_vm0, %v453_v34, %v455_v31 }
 0x43c   :  { %v461_v51 = vadd.f32 %v457_v47, %v1039_v4  ;;  %v462_v52 = vadd.f32 %v458_v48, %v1041_v5 }
 0x441   :  { %v474_v36 = vpop.permute.xlu0 %473  ;;  %v547_v43 = vpop.permute.xlu2 %546 }
 0x442   :  { %v476_v37 = vpop.permute.xlu1 %475 }
 0x443   :  { %v480_v49 = vsel %vm479_vm1, %v474_v36, %v476_v37  ;;  %v481_v50 = vsel %vm479_vm1, %v476_v37, %v478_v32 }
 0x444   :  { %v484_v55 = vadd.f32 %v480_v49, %v461_v51  ;;  %v485_v56 = vadd.f32 %v481_v50, %v462_v52 }
 0x449   :  { %v497_v38 = vpop.permute.xlu0 %496  ;;  %v570_v16 = vpop.permute.xlu2 %569 }
 0x44a   :  { %v499_v40 = vpop.permute.xlu1 %498 }
 0x44b   :  { %v503_v53 = vsel %vm502_vm2, %v497_v38, %v499_v40  ;;  %v504_v54 = vsel %vm502_vm2, %v499_v40, %v501_v35  ;;  %v640_v35 = vld [vmem:[%s1070_s3] sm:$0x3] }
 0x44c   :  { %v507_v61 = vadd.f32 %v503_v53, %v484_v55  ;;  %v508_v62 = vadd.f32 %v504_v54, %v485_v56  ;;  %v643_v40 = vperm.slane %v640_v35, 1 }
 0x451   :  { %v520_v41 = vpop.permute.xlu0 %519  ;;  %v593_v57 = vpop.permute.xlu2 %592 }
 0x452   :  { %v522_v42 = vpop.permute.xlu1 %521 }
 0x453   :  { %v526_v58 = vsel %vm525_vm3, %v520_v41, %v522_v42  ;;  %v527_v59 = vsel %vm525_vm3, %v522_v42, %v524_v39 }
 0x454   :  { %v530_v2 = vadd.f32 %v526_v58, %v507_v61  ;;  %v531_v4 = vadd.f32 %v527_v59, %v508_v62 }
 0x459   :  { %v543_v12 = vpop.permute.xlu0 %542  ;;  %v616_v14 = vpop.permute.xlu2 %615 }
 0x45a   :  { %v545_v44 = vpop.permute.xlu1 %544 }
 0x45b   :  { %v549_v0 = vsel %vm548_vm4, %v543_v12, %v545_v44  ;;  %v550_v1 = vsel %vm548_vm4, %v545_v44, %v547_v43  ;;  %v642_v43 = vperm.slane %v640_v35, 0  ;;  %v654_v12 = vlaneseq }
 0x45c   :  { %v553_v7 = vadd.f32 %v549_v0, %v530_v2  ;;  %v554_v8 = vadd.f32 %v550_v1, %v531_v4 }
 0x45d   :  { %vm656_vm9 = vcmp.lt.s32.totalorder %v654_v12, 256 }
 0x461   :  { %v566_v45 = vpop.permute.xlu0 %565 }
 0x462   :  { %v568_v46 = vpop.permute.xlu1 %567 }
 0x463   :  { %v572_v5 = vsel %vm571_vm5, %v566_v45, %v568_v46  ;;  %v573_v6 = vsel %vm571_vm5, %v568_v46, %v570_v16 }
 0x464   :  { %v576_v10 = vadd.f32 %v572_v5, %v553_v7  ;;  %v577_v11 = vadd.f32 %v573_v6, %v554_v8 }
 0x469   :  { %v589_v60 = vpop.permute.xlu0 %588 }
 0x46a   :  { %v591_v63 = vpop.permute.xlu1 %590 }
 0x46b   :  { %v595_v3 = vsel %vm594_vm6, %v589_v60, %v591_v63  ;;  %v596_v9 = vsel %vm594_vm6, %v591_v63, %v593_v57 }
 0x46c   :  { %v599_v15 = vadd.f32 %v595_v3, %v576_v10  ;;  %v600_v17 = vadd.f32 %v596_v9, %v577_v11 }
 0x471   :  { %v612_v13 = vpop.permute.xlu0 %611 }
 0x472   :  { %v614_v18 = vpop.permute.xlu1 %613 }
 0x473   :  { %v618_v21 = vsel %vm617_vm7, %v612_v13, %v614_v18  ;;  %v619_v22 = vsel %vm617_vm7, %v614_v18, %v616_v14 }
 0x474   :  { %v622_v23 = vadd.f32 %v618_v21, %v599_v15  ;;  %v623_v24 = vadd.f32 %v619_v22, %v600_v17 }
 0x476   :  { %v624_v25 = vsub.f32 %v622_v23, %v63_v19  ;;  %v625_v26 = vsub.f32 %v623_v24, %v64_v20 }
 0x478   :  { %v626_v27 = vand.u32 2147483647, %v624_v25  ;;  %v627_v28 = vand.u32 2147483647, %v625_v26 }
 0x47a   :  { %v628_v29 = vrot.slane %v626_v27, 4  ;;  %v634_v30 = vrot.slane %v627_v28, 4 }
 0x47c   :  { %v629_v31 = vadd.f32 %v628_v29, %v626_v27  ;;  %v635_v32 = vadd.f32 %v634_v30, %v627_v28 }
 0x47e   :  { %v630_v33 = vrot.slane %v629_v31, 2  ;;  %v636_v34 = vrot.slane %v635_v32, 2 }
 0x480   :  { %v631_v36 = vadd.f32 %v630_v33, %v629_v31  ;;  %v637_v37 = vadd.f32 %v636_v34, %v635_v32 }
 0x482   :  { %v632_v38 = vrot.slane %v631_v36, 1  ;;  %v638_v39 = vrot.slane %v637_v37, 1 }
 0x484   :  { %v633_v41 = vadd.f32 %v632_v38, %v631_v36  ;;  %v639_v42 = vadd.f32 %v638_v39, %v637_v37 }
 0x486   :  { %v647_v44 = vmul.f32 %v643_v40, %v639_v42  ;;  %v646_v16 = vmul.f32 %v642_v43, %v633_v41 }
 0x488   :  { %v650_v45 = vrot.slane %v647_v44, 7 }
 0x48a   :  { %v652_v46 = vsel %vm651_vm8, %v646_v16, %v650_v45 }
 0x48b   :  { %658 = vst.msk [vmem:[#allocation8] sm:$0x3] %vm656_vm9, %v652_v46 }
 0x48c   :  { %669 = dma.vmem_to_hbm [thread:$0]  %s665_s1, 32, %s667_s2, [#allocation4]  }
 0x48d   :  { %856 = dma.done.wait [#allocation4], 32  }
 0x48e   :  { %857 = vsyncadd [#allocation4], 4294967264 }
 0x48f   :  { %674 = vsyncpa [#allocation3], 1 }
 0x490   :  { %675 = vsyncpa [#allocation6], 1 }
 0x491   :  { %676 = vsyncpa [#allocation4], 1 }

</bundles_post_ra>
